<compile_context>
chip_gen: v7x
topology: tpu7x:2x2x1
jax: 0.10.0
libtpu: 0.0.40
codegen_flags: <defaults>
</compile_context>

<pallas_src>
import math
import functools

import jax
import jax.numpy as jnp
from jax.experimental import pallas as pl
from jax.experimental.pallas import tpu as pltpu


# ----------------------------------------------------------------------------
# Pallas kernel: conv3x3 (stride 1) as 9 shifted matmuls, fused bias+scale
# ----------------------------------------------------------------------------
def _eqconv_shifted_kernel(x_ref, w_ref, b_ref, o_ref, *, KH, KW, Wp, out_len):
    # x_ref: (C_in, L_pad)          flattened zero-padded plane, one batch elem
    # w_ref: (KH, KW, C_out, C_in)  pre-scaled equalized-lr weights
    # b_ref: (C_out, 1)             pre-scaled bias
    # o_ref: (C_out, out_len)       out_len = H_out * Wp  (lane-dense)
    xv = x_ref[...]                      # whole plane: only a few vregs here
    wv = w_ref[...]
    acc = jnp.zeros(o_ref.shape, jnp.float32)
    for dh in range(KH):                 # static, unrolled 9x
        for dw in range(KW):
            off = dh * Wp + dw           # static shift into the flat plane
            xs = xv[:, off:off + out_len]            # (C_in, out_len)
            acc = acc + jnp.dot(wv[dh, dw], xs,
                                preferred_element_type=jnp.float32)
    acc = acc + b_ref[...]               # scale already folded into w and b
    o_ref[...] = acc.astype(o_ref.dtype)


# ----------------------------------------------------------------------------
# ConstrainedLayer forward (Conv2d module), NCHW in / NCHW out
# ----------------------------------------------------------------------------
def constrained_conv2d_forward(x_nchw, weight, bias, scale, *, padding=1):
    """x: [N, C_in, H, W]; weight: [C_out, C_in, KH, KW]; bias: [C_out]."""
    N, C_in, H, W = x_nchw.shape
    C_out, _, KH, KW = weight.shape
    p = padding

    Wp = W + 2 * p                       # padded row width (flat row stride)
    H_out = H + 2 * p - KH + 1
    W_out = W + 2 * p - KW + 1
    extra_rows = 1 if KW > 1 else 0      # slack so every shifted slice is in-bounds
    Hp = H + 2 * p + extra_rows
    L_pad = Hp * Wp
    out_len = H_out * Wp                 # per-image flat output (incl. junk cols)

    # --- cheap JAX glue: zero-pad + flatten (NO 9x im2col expansion) ---
    xp = jnp.pad(x_nchw, ((0, 0), (0, 0), (p, p + extra_rows), (p, p)))
    xflat = xp.reshape(N, C_in, L_pad)

    # --- fold equalized-lr scale into weight/bias; pre-transpose weight ---
    w_scaled = (weight * scale).transpose(2, 3, 0, 1)   # (KH, KW, C_out, C_in)
    b_scaled = (bias * scale).reshape(C_out, 1)
    w_scaled = w_scaled.astype(x_nchw.dtype)
    b_scaled = b_scaled.astype(jnp.float32)

    kernel = functools.partial(
        _eqconv_shifted_kernel, KH=KH, KW=KW, Wp=Wp, out_len=out_len
    )

    out_flat = pl.pallas_call(
        kernel,
        out_shape=jax.ShapeDtypeStruct((N, C_out, out_len), x_nchw.dtype),
        grid_spec=pltpu.PrefetchScalarGridSpec(
            num_scalar_prefetch=0,
            grid=(N,),
            in_specs=[
                pl.BlockSpec((None, C_in, L_pad), lambda n: (n, 0, 0)),
                pl.BlockSpec((KH, KW, C_out, C_in), lambda n: (0, 0, 0, 0)),
                pl.BlockSpec((C_out, 1), lambda n: (0, 0)),
            ],
            out_specs=pl.BlockSpec((None, C_out, out_len), lambda n: (n, 0, 0)),
        ),
        compiler_params=pltpu.CompilerParams(
            dimension_semantics=("parallel",)
        ),
    )(xflat, w_scaled, b_scaled)

    # (N, C_out, H_out*Wp) -> (N, C_out, H_out, Wp) -> drop junk right columns
    out = out_flat.reshape(N, C_out, H_out, Wp)[..., :W_out]
    return out


# ----------------------------------------------------------------------------
# Parameter construction mirroring ConstrainedLayer.__init__
# ----------------------------------------------------------------------------
def make_constrained_conv2d_params(
    key, c_in, c_out, k, *, lr_mul=1.0, equalized=True, init_bias_to_zero=True
):
    wkey, bkey = jax.random.split(key)
    # module.weight.data.normal_(0, 1) / lr_mul
    weight = jax.random.normal(wkey, (c_out, c_in, k, k), dtype=jnp.float32)
    if equalized:
        weight = weight / lr_mul
        fan_in = c_in * k * k            # prod(weight.shape[1:])
        scale = math.sqrt(2.0 / fan_in) * lr_mul
    else:
        scale = 1.0
    if init_bias_to_zero:
        bias = jnp.zeros((c_out,), dtype=jnp.float32)
    else:
        bias = jax.random.normal(bkey, (c_out,), dtype=jnp.float32)
    return weight, bias, scale


if __name__ == "__main__":
    key = jax.random.PRNGKey(0)
    kx, kp = jax.random.split(key)

    N, C_in, H, W = 2, 4, 16, 16
    C_out, K = 8, 3

    x = jax.random.normal(kx, (N, C_in, H, W), dtype=jnp.float32)
    weight, bias, scale = make_constrained_conv2d_params(
        kp, C_in, C_out, K, lr_mul=1.0, equalized=True, init_bias_to_zero=True
    )

    out = constrained_conv2d_forward(x, weight, bias, scale, padding=1)
    out = jax.block_until_ready(out)

    # Cross-check against a plain-JAX reference conv (same semantics as
    # nn.Conv2d(..., padding=1) followed by `x *= scale`).
    ref = jax.lax.conv_general_dilated(
        x, weight, window_strides=(1, 1), padding=((1, 1), (1, 1)),
        dimension_numbers=("NCHW", "OIHW", "NCHW"),
    )
    ref = (ref + bias.reshape(1, C_out, 1, 1)) * scale

    assert out.shape == (N, C_out, H, W)
    assert jnp.allclose(out, ref, atol=1e-4, rtol=1e-4)

    print("KERNEL_OK")
</pallas_src>

<mosaic_0001>
module attributes {stable_mosaic.version = 11 : i64} {
  func.func @_eqconv_shifted_kernel(%arg0: i32, %arg1: memref<1x4x342xf32, #tpu.memory_space<vmem>>, %arg2: memref<3x3x8x4xf32, #tpu.memory_space<vmem>>, %arg3: memref<8x1xf32, #tpu.memory_space<vmem>>, %arg4: memref<1x8x288xf32, #tpu.memory_space<vmem>>) attributes {dimension_semantics = [#tpu.dimension_semantics<parallel>], iteration_bounds = array<i64: 2>, scalar_prefetch = 0 : i64, scratch_operands = 0 : i64, tpu.core_type = #tpu.core_type<tc>, window_params = [{transform_indices = @transform_0, window_bounds = array<i64: 1, 4, 342>}, {pipeline_mode = #tpu.pipeline_mode<synchronous>, transform_indices = @transform_1, window_bounds = array<i64: 3, 3, 8, 4>}, {pipeline_mode = #tpu.pipeline_mode<synchronous>, transform_indices = @transform_2, window_bounds = array<i64: 8, 1>}, {transform_indices = @transform_3, window_bounds = array<i64: 1, 8, 288>}]} {
    %c0 = arith.constant 0 : index
    %c0_0 = arith.constant 0 : index
    %c0_1 = arith.constant 0 : index
    %0 = vector.load %arg1[%c0, %c0_0, %c0_1] : memref<1x4x342xf32, #tpu.memory_space<vmem>>, vector<1x4x342xf32>
    %1 = vector.shape_cast %0 : vector<1x4x342xf32> to vector<4x342xf32>
    %c0_2 = arith.constant 0 : index
    %c0_3 = arith.constant 0 : index
    %c0_4 = arith.constant 0 : index
    %c0_5 = arith.constant 0 : index
    %2 = vector.load %arg2[%c0_2, %c0_3, %c0_4, %c0_5] : memref<3x3x8x4xf32, #tpu.memory_space<vmem>>, vector<3x3x8x4xf32>
    %cst = arith.constant 0.000000e+00 : f32
    %3 = vector.broadcast %cst : f32 to vector<8x288xf32>
    %4 = vector.extract_strided_slice %1 {offsets = [0, 0], sizes = [4, 288], strides = [1, 1]} : vector<4x342xf32> to vector<4x288xf32>
    %5 = vector.extract_strided_slice %2 {offsets = [0, 0, 0, 0], sizes = [1, 1, 8, 4], strides = [1, 1, 1, 1]} : vector<3x3x8x4xf32> to vector<1x1x8x4xf32>
    %6 = vector.shape_cast %5 : vector<1x1x8x4xf32> to vector<8x4xf32>
    %cst_6 = arith.constant dense<0.000000e+00> : vector<8x288xf32>
    %7 = tpu.matmul %6, %4, %cst_6 {dimension_numbers = #tpu.dot_dimension_numbers<[1], [0], [0], [1], [0, 0, 1, 1], [], []>} : vector<8x4xf32>, vector<4x288xf32>, vector<8x288xf32> -> vector<8x288xf32>
    %8 = arith.addf %3, %7 : vector<8x288xf32>
    %9 = vector.extract_strided_slice %1 {offsets = [0, 1], sizes = [4, 288], strides = [1, 1]} : vector<4x342xf32> to vector<4x288xf32>
    %10 = vector.extract_strided_slice %2 {offsets = [0, 1, 0, 0], sizes = [1, 1, 8, 4], strides = [1, 1, 1, 1]} : vector<3x3x8x4xf32> to vector<1x1x8x4xf32>
    %11 = vector.shape_cast %10 : vector<1x1x8x4xf32> to vector<8x4xf32>
    %cst_7 = arith.constant dense<0.000000e+00> : vector<8x288xf32>
    %12 = tpu.matmul %11, %9, %cst_7 {dimension_numbers = #tpu.dot_dimension_numbers<[1], [0], [0], [1], [0, 0, 1, 1], [], []>} : vector<8x4xf32>, vector<4x288xf32>, vector<8x288xf32> -> vector<8x288xf32>
    %13 = arith.addf %8, %12 : vector<8x288xf32>
    %14 = vector.extract_strided_slice %1 {offsets = [0, 2], sizes = [4, 288], strides = [1, 1]} : vector<4x342xf32> to vector<4x288xf32>
    %15 = vector.extract_strided_slice %2 {offsets = [0, 2, 0, 0], sizes = [1, 1, 8, 4], strides = [1, 1, 1, 1]} : vector<3x3x8x4xf32> to vector<1x1x8x4xf32>
    %16 = vector.shape_cast %15 : vector<1x1x8x4xf32> to vector<8x4xf32>
    %cst_8 = arith.constant dense<0.000000e+00> : vector<8x288xf32>
    %17 = tpu.matmul %16, %14, %cst_8 {dimension_numbers = #tpu.dot_dimension_numbers<[1], [0], [0], [1], [0, 0, 1, 1], [], []>} : vector<8x4xf32>, vector<4x288xf32>, vector<8x288xf32> -> vector<8x288xf32>
    %18 = arith.addf %13, %17 : vector<8x288xf32>
    %19 = vector.extract_strided_slice %1 {offsets = [0, 18], sizes = [4, 288], strides = [1, 1]} : vector<4x342xf32> to vector<4x288xf32>
    %20 = vector.extract_strided_slice %2 {offsets = [1, 0, 0, 0], sizes = [1, 1, 8, 4], strides = [1, 1, 1, 1]} : vector<3x3x8x4xf32> to vector<1x1x8x4xf32>
    %21 = vector.shape_cast %20 : vector<1x1x8x4xf32> to vector<8x4xf32>
    %cst_9 = arith.constant dense<0.000000e+00> : vector<8x288xf32>
    %22 = tpu.matmul %21, %19, %cst_9 {dimension_numbers = #tpu.dot_dimension_numbers<[1], [0], [0], [1], [0, 0, 1, 1], [], []>} : vector<8x4xf32>, vector<4x288xf32>, vector<8x288xf32> -> vector<8x288xf32>
    %23 = arith.addf %18, %22 : vector<8x288xf32>
    %24 = vector.extract_strided_slice %1 {offsets = [0, 19], sizes = [4, 288], strides = [1, 1]} : vector<4x342xf32> to vector<4x288xf32>
    %25 = vector.extract_strided_slice %2 {offsets = [1, 1, 0, 0], sizes = [1, 1, 8, 4], strides = [1, 1, 1, 1]} : vector<3x3x8x4xf32> to vector<1x1x8x4xf32>
    %26 = vector.shape_cast %25 : vector<1x1x8x4xf32> to vector<8x4xf32>
    %cst_10 = arith.constant dense<0.000000e+00> : vector<8x288xf32>
    %27 = tpu.matmul %26, %24, %cst_10 {dimension_numbers = #tpu.dot_dimension_numbers<[1], [0], [0], [1], [0, 0, 1, 1], [], []>} : vector<8x4xf32>, vector<4x288xf32>, vector<8x288xf32> -> vector<8x288xf32>
    %28 = arith.addf %23, %27 : vector<8x288xf32>
    %29 = vector.extract_strided_slice %1 {offsets = [0, 20], sizes = [4, 288], strides = [1, 1]} : vector<4x342xf32> to vector<4x288xf32>
    %30 = vector.extract_strided_slice %2 {offsets = [1, 2, 0, 0], sizes = [1, 1, 8, 4], strides = [1, 1, 1, 1]} : vector<3x3x8x4xf32> to vector<1x1x8x4xf32>
    %31 = vector.shape_cast %30 : vector<1x1x8x4xf32> to vector<8x4xf32>
    %cst_11 = arith.constant dense<0.000000e+00> : vector<8x288xf32>
    %32 = tpu.matmul %31, %29, %cst_11 {dimension_numbers = #tpu.dot_dimension_numbers<[1], [0], [0], [1], [0, 0, 1, 1], [], []>} : vector<8x4xf32>, vector<4x288xf32>, vector<8x288xf32> -> vector<8x288xf32>
    %33 = arith.addf %28, %32 : vector<8x288xf32>
    %34 = vector.extract_strided_slice %1 {offsets = [0, 36], sizes = [4, 288], strides = [1, 1]} : vector<4x342xf32> to vector<4x288xf32>
    %35 = vector.extract_strided_slice %2 {offsets = [2, 0, 0, 0], sizes = [1, 1, 8, 4], strides = [1, 1, 1, 1]} : vector<3x3x8x4xf32> to vector<1x1x8x4xf32>
    %36 = vector.shape_cast %35 : vector<1x1x8x4xf32> to vector<8x4xf32>
    %cst_12 = arith.constant dense<0.000000e+00> : vector<8x288xf32>
    %37 = tpu.matmul %36, %34, %cst_12 {dimension_numbers = #tpu.dot_dimension_numbers<[1], [0], [0], [1], [0, 0, 1, 1], [], []>} : vector<8x4xf32>, vector<4x288xf32>, vector<8x288xf32> -> vector<8x288xf32>
    %38 = arith.addf %33, %37 : vector<8x288xf32>
    %39 = vector.extract_strided_slice %1 {offsets = [0, 37], sizes = [4, 288], strides = [1, 1]} : vector<4x342xf32> to vector<4x288xf32>
    %40 = vector.extract_strided_slice %2 {offsets = [2, 1, 0, 0], sizes = [1, 1, 8, 4], strides = [1, 1, 1, 1]} : vector<3x3x8x4xf32> to vector<1x1x8x4xf32>
    %41 = vector.shape_cast %40 : vector<1x1x8x4xf32> to vector<8x4xf32>
    %cst_13 = arith.constant dense<0.000000e+00> : vector<8x288xf32>
    %42 = tpu.matmul %41, %39, %cst_13 {dimension_numbers = #tpu.dot_dimension_numbers<[1], [0], [0], [1], [0, 0, 1, 1], [], []>} : vector<8x4xf32>, vector<4x288xf32>, vector<8x288xf32> -> vector<8x288xf32>
    %43 = arith.addf %38, %42 : vector<8x288xf32>
    %44 = vector.extract_strided_slice %1 {offsets = [0, 38], sizes = [4, 288], strides = [1, 1]} : vector<4x342xf32> to vector<4x288xf32>
    %45 = vector.extract_strided_slice %2 {offsets = [2, 2, 0, 0], sizes = [1, 1, 8, 4], strides = [1, 1, 1, 1]} : vector<3x3x8x4xf32> to vector<1x1x8x4xf32>
    %46 = vector.shape_cast %45 : vector<1x1x8x4xf32> to vector<8x4xf32>
    %cst_14 = arith.constant dense<0.000000e+00> : vector<8x288xf32>
    %47 = tpu.matmul %46, %44, %cst_14 {dimension_numbers = #tpu.dot_dimension_numbers<[1], [0], [0], [1], [0, 0, 1, 1], [], []>} : vector<8x4xf32>, vector<4x288xf32>, vector<8x288xf32> -> vector<8x288xf32>
    %48 = arith.addf %43, %47 : vector<8x288xf32>
    %c0_15 = arith.constant 0 : index
    %c0_16 = arith.constant 0 : index
    %49 = vector.load %arg3[%c0_15, %c0_16] : memref<8x1xf32, #tpu.memory_space<vmem>>, vector<8x1xf32>
    %50 = vector.broadcast %49 : vector<8x1xf32> to vector<8x288xf32>
    %51 = arith.addf %48, %50 : vector<8x288xf32>
    %c0_17 = arith.constant 0 : index
    %c0_18 = arith.constant 0 : index
    %c0_19 = arith.constant 0 : index
    %52 = vector.load %arg4[%c0_17, %c0_18, %c0_19] : memref<1x8x288xf32, #tpu.memory_space<vmem>>, vector<1x8x288xf32>
    %53 = vector.shape_cast %52 : vector<1x8x288xf32> to vector<8x288xf32>
    %54 = vector.shape_cast %51 : vector<8x288xf32> to vector<1x8x288xf32>
    tpu.vector_store %arg4[%c0_17, %c0_18, %c0_19], %54 {strides = array<i32>} : memref<1x8x288xf32, #tpu.memory_space<vmem>>, vector<1x8x288xf32>,
    return
  }
  func.func @transform_0(%arg0: i32) -> (i32, i32, i32) {
    %c0_i32 = arith.constant 0 : i32
    %c0_i32_0 = arith.constant 0 : i32
    %c0_i32_1 = arith.constant 0 : i32
    return %arg0, %c0_i32, %c0_i32_0 : i32, i32, i32
  }
  func.func @transform_1(%arg0: i32) -> (i32, i32, i32, i32) {
    %c0_i32 = arith.constant 0 : i32
    %c0_i32_0 = arith.constant 0 : i32
    %c0_i32_1 = arith.constant 0 : i32
    %c0_i32_2 = arith.constant 0 : i32
    %c0_i32_3 = arith.constant 0 : i32
    return %c0_i32, %c0_i32_0, %c0_i32_1, %c0_i32_2 : i32, i32, i32, i32
  }
  func.func @transform_2(%arg0: i32) -> (i32, i32) {
    %c0_i32 = arith.constant 0 : i32
    %c0_i32_0 = arith.constant 0 : i32
    %c0_i32_1 = arith.constant 0 : i32
    return %c0_i32, %c0_i32_0 : i32, i32
  }
  func.func @transform_3(%arg0: i32) -> (i32, i32, i32) {
    %c0_i32 = arith.constant 0 : i32
    %c0_i32_0 = arith.constant 0 : i32
    %c0_i32_1 = arith.constant 0 : i32
    return %arg0, %c0_i32, %c0_i32_0 : i32, i32, i32
  }
}

</mosaic_0001>

<bundles_post_ra>
// kernel: tpu_custom_call.1
= control target key start
LH: loop header
LB: loop body
LE: loop exit
PB: predicated region body
PF: predicated region fallthrough
CT: control target
= control target key end

     0   :  { %8 = vsyncpa [#allocation3], 0  ;;  %s2219_s0 = inlined_call_operand.vmem [shape: f32[2,4,342], index: 0, kind: input, shape index: {}]   ;;  %s2220_s1 = inlined_call_operand.vmem [shape: f32[3,3,8,4], index: 1, kind: input, shape index: {}]   ;;  %s2221_s2 = inlined_call_operand.vmem [shape: f32[8,1], index: 2, kind: input, shape index: {}]   ;;  %s2222_s3 = inlined_call_operand.hbm [shape: f32[2,8,288], index: 3, kind: output, shape index: {}]  }
   0x1   :  { %10 = vsyncpa [#allocation3 + $0x1], 0  ;;  %s1998_s12 = smov 0   ;;  %s2000_s13 = smov 0  }
   0x2   :  { %s2002_s14 = smov 0   ;;  %s2004_s15 = smov 0  }
   0x3 LB: > { %s2019_s16 = sadd.s32 4294967295, %s1964_s15   ;;  %s1715_s17 = sadd.s32 4294967294, %s1964_s15   ;;  %s1964_s15 = sphi %s2004_s15, %s2228_s15   ;;  %s1960_s14 = sphi %s2002_s14, %s2227_s14   ;;  %s1956_s13 = sphi %s2000_s13, %s2226_s13   ;;  %s1952_s12 = sphi %s1998_s12, %s2225_s12  }
   0x4   : > { %s2023_s18 = sadd.s32 1, %s1964_s15   ;;  %s91_s19 = sadd.s32 1, %s1960_s14 }
   0x5   : > { %s88_s20 = ssub.s32 %s1964_s15, %s2023_s18  ;;  %p101_p0 = scmp.ne.s32.totalorder %s1960_s14, %s1956_s13 }
   0x6   : > { %p89_p1 = scmp.eq.s32.totalorder %s88_s20, 0  ;;  %p102_p2 = scmp.eq.s32.totalorder %s2019_s16, 1 }
   0x7   : > { %p107_p3 = scmp.ne.s32.totalorder %s1956_s13, %s1952_s12  ;;  %p108_p4 = scmp.eq.s32.totalorder %s1715_s17, 1 }
   0x8   : > { %s2034_s21 = scalar_select %p89_p1, %s1960_s14, %s91_s19  }
   0x9   : > { %p2036_p5 = por %p102_p2, %p101_p0  ;;  %p2040_p6 = por %p108_p4, %p107_p3 }
   0xa   : > { %p1718_p7 = scmp.ge.s32.totalorder %s1964_s15, 1  ;;  %p140_p8 = scmp.lt.s32.totalorder %s1964_s15, 3 }
   0xc   : > { %p141_p9 = pnand %p1718_p7, %p140_p8 }
   0xd   : > { %p164_p10 = scmp.lt.s32.totalorder (!%p141_p9), %s2019_s16, 1  ;;  %v1966_v0 = vmov (!%p141_p9), 0.0   ;;  %vm1967_vm0 = vmmov (!%p141_p9), 0   ;;  %s1968_s29 = smov (!%p141_p9), 127   ;;  %v1628_v4 = vld [vmem:[%s2221_s2] sm:$0xff] (!%p141_p9)  ;;  %v1976_v5 = vmov (!%p141_p9), 0  }
   0xe   : > { %144 = sbr.rel (%p141_p9) target bundleno = 444 (0x1bc), region = 32  ;;  %1786 = vmatprep.subr.mxu1 (!%p141_p9), %v1966_v0  ;;  %267 = vmatprep.mubr.f32.mxu0 (!%p141_p9), %v1966_v0  ;;  %s1969_s30 = smov (!%p141_p9), 126   ;;  %vm196_vm1 = vcmask (!%p141_p9), 1043456   ;;  %vm189_vm2 = vcmask (!%p141_p9), 1039360   ;;  %v172_v11 = vld [vmem:[%s2220_s1 + $0x8] sm:$0xff] (!%p141_p9)  ;;  %vm192_vm3 = vcmask (!%p141_p9), 31744  }
   0xf   : > { %1788 = vmatprep.mubr.msk.f32.mxu1 (!%p141_p9), %vm1967_vm0, %v1966_v0  ;;  %s1970_s4 = smov (!%p141_p9), 110   ;;  %s1971_s5 = smov (!%p141_p9), 109   ;;  %1900 = vset.pattern.permute.xlu0 (!%p141_p9), %v1976_v5  ;;  %vm500_vm4 = vcmask (!%p141_p9), 1031168   ;;  %v171_v17 = vld [vmem:[%s2220_s1] sm:$0xff] (!%p141_p9)  ;;  %vm662_vm5 = vcmask (!%p141_p9), 900096   ;;  %v173_v22 = vld [vmem:[%s2220_s1 + $0x10] sm:$0xff] (!%p141_p9) }
  0x10   : > { %s1972_s6 = smov (!%p141_p9), 108   ;;  %s1973_s7 = smov (!%p141_p9), 92   ;;  %v174_v24 = vld [vmem:[%s2220_s1 + $0x18] sm:$0xff] (!%p141_p9)  ;;  %vm824_vm6 = vcmask (!%p141_p9), 891904   ;;  %v175_v27 = vld [vmem:[%s2220_s1 + $0x20] sm:$0xff] (!%p141_p9)  ;;  %v176_v32 = vld [vmem:[%s2220_s1 + $0x28] sm:$0xff] (!%p141_p9) }
  0x11   : > { %s1974_s8 = smov (!%p141_p9), 91   ;;  %s1975_s9 = smov (!%p141_p9), 90   ;;  %vm986_vm7 = vcmask (!%p141_p9), 883712   ;;  %v177_v39 = vld [vmem:[%s2220_s1 + $0x30] sm:$0xff] (!%p141_p9)  ;;  %vm1148_vm8 = vcmask (!%p141_p9), 752640   ;;  %v178_v42 = vld [vmem:[%s2220_s1 + $0x38] sm:$0xff] (!%p141_p9) }
  0x12   : > { %v179_v46 = vld [vmem:[%s2220_s1 + $0x40] sm:$0xff] (!%p141_p9)  ;;  %vm1310_vm9 = vcmask (!%p141_p9), 744448   ;;  %vm1472_vm10 = vcmask (!%p141_p9), 736256   ;;  %s161_s17 = sand.u32 (!%p141_p9), 1, %s1956_s13   ;;  %vm1639_vm11 = vcmask (!%p141_p9), 261120  }
  0x13   : > { %s1847_s19 = smul.u32 (!%p141_p9), 24, %s161_s17 }
  0x15   : > { %s165_s24 = scalar_select %p164_p10, %s2019_s16, 1 }
  0x16   : > { %s163_s20 = scalar_lea.vmem [#allocation2], %s1847_s19 }
  0x17   : > { %s1848_s25 = smul.u32 12, %s165_s24 }
  0x18   : > { %s1849_s24 = smul.u32 384, %s2019_s16  ;;  %s1977_s16 = smov [#allocation2]  }
  0x19   : > { %s168_s28 = scalar_lea.vmem %s2219_s0, %s1848_s25  ;;  %s1656_s25 = sshll.u32 %s163_s20, 4  ;;  %s2179_s25 = int_to_ptr.vmem [resolvable:$true] %s1656_s25 }
  0x1a   : > { %v169_v1 = vld [vmem:[%s168_s28] sm:$0xff]  ;;  %v170_v3 = vld [vmem:[%s168_s28 + $0x8] sm:$0xf]  ;;  %s2177_s28 = scalar_lea.hbm %s2222_s3, %s1849_s24 }
  0x1b   : > { %183 = vrot.lane.b32.xlu1 %v169_v1, %s1968_s29  ;;  %v182_v2 = vcombine.high %v169_v1, %v169_v1 }
  0x1d   : > { %185 = vrot.lane.b32.xlu0 %v182_v2, %s1968_s29 }
  0x1f   : > { %496 = vrot.lane.b32.xlu1 %v182_v2, %s1969_s30 }
  0x21   : > { %187 = vrot.lane.b32.xlu0 %v170_v3, %s1968_s29  ;;  %s1642_s29 = scalar_lea.sflag [#allocation3], %s161_s17 }
  0x23   : > { %494 = vrot.lane.b32.xlu1 %v169_v1, %s1969_s30 }
  0x25   : > { %498 = vrot.lane.b32.xlu0 %v170_v3, %s1969_s30  ;;  %s1902_s30 = scalar_lea.vmem %s2179_s25, 384 }
  0x26   : > { %p1903_p11 = scmp.ne.s32.totalorder %s2179_s25, %s1902_s30 }
  0x27   : > { %660 = vrot.lane.b32.xlu1 %v170_v3, %s1970_s4 }
  0x28   : > { %p1904_p12 = pnand %p1903_p11, %p2036_p5 }
  0x29   : > { %658 = vrot.lane.b32.xlu0 %v182_v2, %s1970_s4 }
  0x2a   : > { %p1905_p13 = pneg %p1904_p12 }
  0x2b   : > { %820 = vrot.lane.b32.xlu1 %v182_v2, %s1971_s5 }
  0x2d   : > { %656 = vrot.lane.b32.xlu0 %v169_v1, %s1970_s4  ;;  %s1906_s4 = sshll.u32 %s1977_s16, 4  ;;  %s1907_s4 = int_to_ptr.vmem [resolvable:$false] %s1906_s4 }
  0x2e   : > { %p1909_p0 = scmp.lt.s32.totalorder %s2179_s25, %s1907_s4 }
  0x2f   : > { %818 = vrot.lane.b32.xlu1 %v169_v1, %s1971_s5 }
  0x31   : > { %822 = vrot.lane.b32.xlu0 %v170_v3, %s1971_s5  ;;  %s1908_s5 = scalar_lea.vmem %s1907_s4, 768 }
  0x32   : > { %p1910_p1 = scmp.lt.s32.totalorder %s1908_s5, %s1902_s30 }
  0x33   : > { %984 = vrot.lane.b32.xlu1 %v170_v3, %s1972_s6 }
  0x34   : > { %p1911_p2 = por %p1910_p1, %p1909_p0 }
  0x35   : > { %982 = vrot.lane.b32.xlu0 %v182_v2, %s1972_s6 }
  0x36   : > { %p1912_p3 = pnand %p1911_p2, %p1905_p13 }
  0x37   : > { %1144 = vrot.lane.b32.xlu1 %v182_v2, %s1973_s7 }
  0x39   : > { %980 = vrot.lane.b32.xlu0 %v169_v1, %s1972_s6 }
  0x3b   : > { %1142 = vrot.lane.b32.xlu1 %v169_v1, %s1973_s7 }
  0x3d   : > { %1146 = vrot.lane.b32.xlu0 %v170_v3, %s1973_s7 }
  0x3f   : > { %1308 = vrot.lane.b32.xlu1 %v170_v3, %s1974_s8 }
  0x41   : > { %1306 = vrot.lane.b32.xlu0 %v182_v2, %s1974_s8 }
  0x43   : > { %1468 = vrot.lane.b32.xlu1 %v182_v2, %s1975_s9 }
  0x45   : > { %1304 = vrot.lane.b32.xlu0 %v169_v1, %s1974_s8 }
  0x47   : > { %1466 = vrot.lane.b32.xlu1 %v169_v1, %s1975_s9 }
  0x49   : > { %1470 = vrot.lane.b32.xlu0 %v170_v3, %s1975_s9 }
  0x4d   : > { %1631 = vperm.xlu0 %1900, %v1628_v4  }
  0x8d   : > { %v184_v6 = vpop.permute.xlu1 %183 }
  0x8f   : > { %v186_v7 = vpop.permute.xlu0 %185 }
  0x90   : > { %v190_v12 = vsel %vm189_vm2, %v184_v6, %v186_v7 }
  0x91   : > { %v497_v8 = vpop.permute.xlu1 %496 }
  0x93   : > { %v188_v9 = vpop.permute.xlu0 %187 }
  0x94   : > { %1787 = vmatpush3.msk.msra.mxu1 %vm196_vm1, %v188_v9  ;;  %v191_v10 = vsel %vm189_vm2, %v186_v7, %v188_v9 }
  0x95   : > { %1720 = vmatprep.subr.msk.mxu0 %vm196_vm1, %v191_v10  ;;  %v495_v13 = vpop.permute.xlu1 %494  ;;  %1789 = vmatmul.mubr.msk.f32.vlgmr.msra.gmra.mrb[0].mxu1 %vm192_vm3, %v172_v11 }
  0x96   : > { %1721 = vmatpush1.msk.msra.mxu0 %vm196_vm1, %v190_v12  ;;  %1791 = vmatprep.subr.mxu1 %v1966_v0  ;;  %v501_v19 = vsel %vm500_vm4, %v495_v13, %v497_v8 }
  0x97   : > { %1722 = vmatmul.mubr.msk.f32.vlgmr.msra.gmra.mrb[0].mxu0 %vm192_vm3, %v172_v11  ;;  %1725 = vmatprep.subr.msk.mxu0 %vm196_vm1, %v182_v2  ;;  %v499_v14 = vpop.permute.xlu0 %498 }
  0x98   : > { %1726 = vmatpush1.msk.msra.mxu0 %vm196_vm1, %v169_v1  ;;  %v502_v15 = vsel %vm500_vm4, %v497_v8, %v499_v14  ;;  %1792 = vmatpush3.msk.msra.mxu1 %vm196_vm1, %v170_v3 }
  0x99   : > { %1730 = vmatprep.subr.msk.mxu0 %vm196_vm1, %v502_v15  ;;  %1793 = vmatprep.mubr.msk.f32.mxu1 %vm1967_vm0, %v1966_v0  ;;  %v661_v16 = vpop.permute.xlu1 %660 }
  0x9a   : > { %1796 = vmatprep.subr.mxu1 %v1966_v0  ;;  %417 = vmatprep.mubr.f32.mxu0 %v1966_v0 }
  0x9b   : > { %1794 = vmatmul.mubr.msk.f32.vlgmr.msra.gmra.mrb[2].mxu1 %vm192_vm3, %v171_v17  ;;  %v659_v18 = vpop.permute.xlu0 %658 }
  0x9c   : > { %1797 = vmatpush3.msk.msra.mxu1 %vm196_vm1, %v499_v14  ;;  %1798 = vmatprep.mubr.msk.f32.mxu1 %vm1967_vm0, %v1966_v0  ;;  %v664_v21 = vsel %vm662_vm5, %v659_v18, %v661_v16 }
  0x9d   : > { %1801 = vmatprep.subr.mxu1 %v1966_v0  ;;  %v821_v20 = vpop.permute.xlu1 %820 }
  0x9f   : > { %1727 = vmatmul.mubr.msk.f32.vlgmr.msra.gmra.mrb[0].mxu0 %vm192_vm3, %v171_v17  ;;  %v657_v23 = vpop.permute.xlu0 %656  ;;  %1799 = vmatmul.mubr.msk.f32.vlgmr.msra.gmra.mrb[4].mxu1 %vm192_vm3, %v173_v22 }
  0xa0   : > { %1731 = vmatpush1.msk.msra.mxu0 %vm196_vm1, %v501_v19  ;;  %576 = vmatprep.mubr.f32.mxu0 %v1966_v0  ;;  %v663_v28 = vsel %vm662_vm5, %v657_v23, %v659_v18 }
  0xa1   : > { %1735 = vmatprep.subr.msk.mxu0 %vm196_vm1, %v664_v21  ;;  %1802 = vmatpush3.msk.msra.mxu1 %vm196_vm1, %v661_v16  ;;  %v819_v25 = vpop.permute.xlu1 %818 }
  0xa2   : > { %1803 = vmatprep.mubr.msk.f32.mxu1 %vm1967_vm0, %v1966_v0  ;;  %1806 = vmatprep.subr.mxu1 %v1966_v0  ;;  %v825_v35 = vsel %vm824_vm6, %v819_v25, %v821_v20 }
  0xa3   : > { %v823_v26 = vpop.permute.xlu0 %822  ;;  %1804 = vmatmul.mubr.msk.f32.vlgmr.msra.gmra.mrb[6].mxu1 %vm192_vm3, %v174_v24 }
  0xa4   : > { %1807 = vmatpush3.msk.msra.mxu1 %vm196_vm1, %v823_v26  ;;  %1808 = vmatprep.mubr.msk.f32.mxu1 %vm1967_vm0, %v1966_v0  ;;  %v826_v30 = vsel %vm824_vm6, %v821_v20, %v823_v26 }
  0xa5   : > { %v985_v29 = vpop.permute.xlu1 %984  ;;  %1811 = vmatprep.subr.mxu1 %v1966_v0 }
  0xa7   : > { %1732 = vmatmul.mubr.msk.f32.vlgmr.msra.gmra.mrb[0].mxu0 %vm192_vm3, %v173_v22  ;;  %v983_v31 = vpop.permute.xlu0 %982  ;;  %1809 = vmatmul.mubr.msk.f32.vlgmr.msra.gmra.mrb[8].mxu1 %vm192_vm3, %v175_v27 }
  0xa8   : > { %1736 = vmatpush1.msk.msra.mxu0 %vm196_vm1, %v663_v28  ;;  %738 = vmatprep.mubr.f32.mxu0 %v1966_v0  ;;  %v988_v37 = vsel %vm986_vm7, %v983_v31, %v985_v29 }
  0xa9   : > { %1740 = vmatprep.subr.msk.mxu0 %vm196_vm1, %v826_v30  ;;  %v1145_v33 = vpop.permute.xlu1 %1144  ;;  %1812 = vmatpush3.msk.msra.mxu1 %vm196_vm1, %v985_v29 }
  0xaa   : > { %1813 = vmatprep.mubr.msk.f32.mxu1 %vm1967_vm0, %v1966_v0  ;;  %1816 = vmatprep.subr.mxu1 %v1966_v0 }
  0xab   : > { %v981_v34 = vpop.permute.xlu0 %980  ;;  %1814 = vmatmul.mubr.msk.f32.vlgmr.msra.gmra.mrb[10].mxu1 %vm192_vm3, %v176_v32 }
  0xac   : > { %1818 = vmatprep.mubr.msk.f32.mxu1 %vm1967_vm0, %v1966_v0  ;;  %v987_v43 = vsel %vm986_vm7, %v981_v34, %v983_v31 }
  0xad   : > { %v1143_v36 = vpop.permute.xlu1 %1142 }
  0xae   : > { %v1149_v48 = vsel %vm1148_vm8, %v1143_v36, %v1145_v33 }
  0xaf   : > { %1737 = vmatmul.mubr.msk.f32.vlgmr.msra.gmra.mrb[0].mxu0 %vm192_vm3, %v174_v24  ;;  %v1147_v38 = vpop.permute.xlu0 %1146 }
  0xb0   : > { %1741 = vmatpush1.msk.msra.mxu0 %vm196_vm1, %v825_v35  ;;  %900 = vmatprep.mubr.f32.mxu0 %v1966_v0  ;;  %v1150_v44 = vsel %vm1148_vm8, %v1145_v33, %v1147_v38 }
  0xb1   : > { %1745 = vmatprep.subr.msk.mxu0 %vm196_vm1, %v988_v37  ;;  %1817 = vmatpush3.msk.msra.mxu1 %vm196_vm1, %v1147_v38  ;;  %v1309_v40 = vpop.permute.xlu1 %1308 }
  0xb2   : > { %1819 = vmatmul.mubr.msk.f32.vlgmr.msra.gmra.mrb[12].mxu1 %vm192_vm3, %v177_v39  ;;  %1821 = vmatprep.subr.mxu1 %v1966_v0 }
  0xb3   : > { %v1307_v41 = vpop.permute.xlu0 %1306  ;;  %1822 = vmatpush3.msk.msra.mxu1 %vm196_vm1, %v1309_v40  ;;  %1823 = vmatprep.mubr.msk.f32.mxu1 %vm1967_vm0, %v1966_v0 }
  0xb4   : > { %1826 = vmatprep.subr.mxu1 %v1966_v0  ;;  %v1312_v49 = vsel %vm1310_vm9, %v1307_v41, %v1309_v40 }
  0xb5   : > { %v1469_v50 = vpop.permute.xlu1 %1468 }
  0xb6   : > { %1824 = vmatmul.mubr.msk.f32.vlgmr.msra.gmra.mrb[14].mxu1 %vm192_vm3, %v178_v42 }
  0xb7   : > { %1742 = vmatmul.mubr.msk.f32.vlgmr.msra.gmra.mrb[0].mxu0 %vm192_vm3, %v175_v27  ;;  %v1305_v45 = vpop.permute.xlu0 %1304  ;;  %1828 = vmatprep.mubr.msk.f32.mxu1 %vm1967_vm0, %v1966_v0 }
  0xb8   : > { %1746 = vmatpush1.msk.msra.mxu0 %vm196_vm1, %v987_v43  ;;  %1062 = vmatprep.mubr.f32.mxu0 %v1966_v0  ;;  %v1311_v51 = vsel %vm1310_vm9, %v1305_v45, %v1307_v41 }
  0xb9   : > { %1750 = vmatprep.subr.msk.mxu0 %vm196_vm1, %v1150_v44  ;;  %v1467_v53 = vpop.permute.xlu1 %1466 }
  0xba   : > { %v1473_v54 = vsel %vm1472_vm10, %v1467_v53, %v1469_v50 }
  0xbb   : > { %v1471_v47 = vpop.permute.xlu0 %1470 }
  0xbc   : > { %1827 = vmatpush3.msk.msra.mxu1 %vm196_vm1, %v1471_v47  ;;  %v1474_v52 = vsel %vm1472_vm10, %v1469_v50, %v1471_v47 }
  0xbd   : > { %1829 = vmatmul.mubr.msk.f32.vlgmr.msra.gmra.mrb[16].mxu1 %vm192_vm3, %v179_v46 }
  0xbf   : > { %1747 = vmatmul.mubr.msk.f32.vlgmr.msra.gmra.mrb[0].mxu0 %vm192_vm3, %v176_v32 }
  0xc0   : > { %1751 = vmatpush1.msk.msra.mxu0 %vm196_vm1, %v1149_v48  ;;  %1224 = vmatprep.mubr.f32.mxu0 %v1966_v0 }
  0xc1   : > { %1755 = vmatprep.subr.msk.mxu0 %vm196_vm1, %v1312_v49 }
  0xc7   : > { %1752 = vmatmul.mubr.msk.f32.vlgmr.msra.gmra.mrb[0].mxu0 %vm192_vm3, %v177_v39 }
  0xc8   : > { %1756 = vmatpush1.msk.msra.mxu0 %vm196_vm1, %v1311_v51  ;;  %1386 = vmatprep.mubr.f32.mxu0 %v1966_v0 }
  0xc9   : > { %1760 = vmatprep.subr.msk.mxu0 %vm196_vm1, %v1474_v52 }
  0xcc   : > { %v1632_v15 = vpop.permute.xlu0 %1631 }
  0xcf   : > { %1757 = vmatmul.mubr.msk.f32.vlgmr.msra.gmra.mrb[0].mxu0 %vm192_vm3, %v178_v42 }
  0xd0   : > { %1761 = vmatpush1.msk.msra.mxu0 %vm196_vm1, %v1473_v54  ;;  %1548 = vmatprep.mubr.f32.mxu0 %v1966_v0 }
  0xd7   : > { %1762 = vmatmul.mubr.msk.f32.vlgmr.msra.gmra.mrb[0].mxu0 %vm192_vm3, %v179_v46 }
 0x168   : > { %v340_v55 = vpop.f32.mrb[0].mxu1 }
 0x169   : > { %v1790_v56 = vpop.f32.mrb[1].mxu1 }
 0x16e   : > { %v490_v57 = vpop.f32.mrb[2].mxu1 }
 0x16f   : > { %v491_v58 = vadd.f32 %v490_v57, %v340_v55  ;;  %v1795_v59 = vpop.f32.mrb[3].mxu1 }
 0x172   : > { %v649_v60 = vpop.f32.mrb[4].mxu1 }
 0x173   : > { %v655_v61 = vadd.f32 %v649_v60, %v491_v58  ;;  %v1800_v62 = vpop.f32.mrb[5].mxu1 }
 0x176   : > { %v811_v63 = vpop.f32.mrb[6].mxu1 }
 0x177   : > { %v817_v1 = vadd.f32 %v811_v63, %v655_v61  ;;  %v1805_v2 = vpop.f32.mrb[7].mxu1 }
 0x17a   : > { %v973_v3 = vpop.f32.mrb[8].mxu1 }
 0x17b   : > { %v979_v4 = vadd.f32 %v973_v3, %v817_v1  ;;  %v1810_v5 = vpop.f32.mrb[9].mxu1 }
 0x17e   : > { %v1135_v6 = vpop.f32.mrb[10].mxu1 }
 0x17f   : > { %v1141_v7 = vadd.f32 %v1135_v6, %v979_v4  ;;  %v1815_v0 = vpop.f32.mrb[11].mxu1 }
 0x185   : > { %v1297_v8 = vpop.f32.mrb[12].mxu1 }
 0x186   : > { %v1303_v9 = vadd.f32 %v1297_v8, %v1141_v7  ;;  %v1820_v10 = vpop.f32.mrb[13].mxu1 }
 0x189   : > { %v1459_v11 = vpop.f32.mrb[14].mxu1 }
 0x18a   : > { %v1465_v12 = vadd.f32 %v1459_v11, %v1303_v9  ;;  %v1825_v13 = vpop.f32.mrb[15].mxu1 }
 0x190   : > { %v1621_v14 = vpop.f32.mrb[16].mxu1 }
 0x191   : > { %v1627_v16 = vadd.f32 %v1621_v14, %v1465_v12  ;;  %v1830_v17 = vpop.f32.mrb[17].mxu1 }
 0x193   : > { %v1636_v18 = vadd.f32 %v1632_v15, %v1627_v16 }
 0x195   : > { %1640 = vst.msk [vmem:[%s163_s20 + $0x10] sm:$0xff] %vm1639_vm11, %v1636_v18 }
 0x1aa   : > { %v1550_v19 = vpop.f32.mrb[0].mxu0 }
 0x1ab   : > { %v1634_v20 = vadd.f32 %v1632_v15, %v1550_v19  ;;  %v1552_v21 = vpop.f32.mrb[1].mxu0 }
 0x1ac   : > { %v1635_v22 = vadd.f32 %v1632_v15, %v1552_v21 }
 0x1ad   : > { %1637 = vst [vmem:[%s163_s20] sm:$0xff] %v1634_v20 }
 0x1ae   : > { %1638 = vst [vmem:[%s163_s20 + $0x8] sm:$0xff] %v1635_v22 }
 0x1af   : > { %1915 = shalt.err (!%p1912_p3)
}
 0x1b0   : > { %s1916_s6 = scalar_lea.hbm %s2177_s28, 384  ;;  %s1920_s9 = scalar_lea.hbm %s2222_s3, 768 }
 0x1b1   : > { %p1917_p4 = scmp.ne.s32.totalorder %s2177_s28, %s1916_s6  ;;  %p1921_p9 = scmp.lt.u32.totalorder %s2177_s28, %s2222_s3 }
 0x1b2   : > { %p1922_p10 = scmp.lt.u32.totalorder %s1920_s9, %s1916_s6  ;;  %p1924_p12 = scmp.lt.u32.totalorder %s1916_s6, %s2177_s28 }
 0x1b3   : > { %p1918_p7 = pnand %p1917_p4, %p2036_p5 }
 0x1b4   : > { %p1923_p11 = por %p1922_p10, %p1921_p9 }
 0x1b5   : > { %p1919_p8 = pneg %p1918_p7 }
 0x1b6   : > { %p1925_p13 = por %p1924_p12, %p1923_p11 }
 0x1b8   : > { %p1926_p0 = pnand %p1925_p13, %p1919_p8 }
 0x1ba   : > { %1929 = shalt.err (!%p1926_p0)
}
 0x1bb   : > { %1850 = dma.vmem_to_hbm [thread:$0]  (%p2036_p5), %s2179_s25, 384, %s2177_s28, %s1642_s29  }
 0x1bc PF: > { %p1856_p1 = scmp.ge.s32.totalorder %s1964_s15, 2  ;;  %s1668_s17 = sand.u32 1, %s1952_s12  }
 0x1bd   : > { %s1669_s19 = scalar_lea.sflag [#allocation3], %s1668_s17 }
 0x1be   : > { %p1853_p2 = pnand %p1856_p1, %p2040_p6 }
 0x1c0   : > { %1947 = dma.done.wait (!%p1853_p2), %s1669_s19, 384  }
 0x1c1   : > { %1949 = vsyncadd (!%p1853_p2), %s1669_s19, 4294966912  ;;  %p13_p3 = scmp.ge.s32.totalorder %s2023_s18, 4   ;;  %s2225_s12 = smov %s1956_s13 }
 0x1c2   : > { %s2226_s13 = smov %s1960_s14  ;;  %s2227_s14 = smov %s2034_s21 }
 0x1c3   : > { %s2228_s15 = smov %s2023_s18  ;;  %15 = sbr.rel (!%p13_p3) target bundleno = 3 (0x3), region = 67 }
 0x1ca   :  { %1674 = vsyncpa [#allocation3], 1 }
 0x1cb   :  { %1676 = vsyncpa [#allocation3 + $0x1], 1 }

</bundles_post_ra>
